<compile_context>
chip_gen: v7x
topology: tpu7x:2x2x1
jax: 0.10.0
libtpu: 0.0.40
codegen_flags: <defaults>
</compile_context>

<pallas_src>
import jax
import jax.numpy as jnp
from jax.experimental import pallas as pl
from jax.experimental.pallas import tpu as pltpu


# ---------------------------------------------------------------------------
# Pallas kernel: batched (over a block of modes) stacked real matmul.
#   x block : (mt, Bp, 2*Ci)    bf16
#   w block : (mt, 2*Ci, 2*Co)  bf16   (stacked [[wr, wi], [-wi, wr]] per mode)
#   o block : (mt, Bp, 2*Co)    f32    ([real || imag] concatenated on lanes)
# ---------------------------------------------------------------------------
def _spectral_mul_kernel(x_ref, w_ref, o_ref):
    o_ref[...] = jax.lax.dot_general(
        x_ref[...], w_ref[...],
        dimension_numbers=(((2,), (1,)), ((0,), (0,))),   # mbi,mio->mbo
        preferred_element_type=jnp.float32)


def _choose_mode_block(M, Bp, two_ci, two_co, vmem_budget_bytes=16 * 1024 * 1024):
    """Largest mode block whose double-buffered tiles fit the VMEM budget."""
    per_mode = (2 * (Bp * two_ci * 2 + two_ci * two_co * 2)   # bf16 inputs, 2 bufs
                + 2 * (Bp * two_co * 4))                      # f32 output, 2 bufs
    mt = vmem_budget_bytes // max(per_mode, 1)
    return int(max(1, min(M, mt)))


def _compl_mul1d_pallas(x_stacked, w_stacked, mt):
    """x_stacked: (Mp, Bp, 2Ci) bf16; w_stacked: (Mp, 2Ci, 2Co) bf16.
    Returns (Mp, Bp, 2Co) float32 = [real || imag] per mode."""
    Mp, Bp, two_ci = x_stacked.shape
    two_co = w_stacked.shape[-1]
    grid = (Mp // mt,)
    return pl.pallas_call(
        _spectral_mul_kernel,
        out_shape=jax.ShapeDtypeStruct((Mp, Bp, two_co), jnp.float32),
        grid_spec=pltpu.PrefetchScalarGridSpec(
            num_scalar_prefetch=0,
            grid=grid,
            in_specs=[
                pl.BlockSpec((mt, Bp, two_ci), lambda m: (m, 0, 0)),
                pl.BlockSpec((mt, two_ci, two_co), lambda m: (m, 0, 0)),
            ],
            out_specs=pl.BlockSpec((mt, Bp, two_co), lambda m: (m, 0, 0)),
        ),
        compiler_params=pltpu.CompilerParams(
            dimension_semantics=("parallel",),
            vmem_limit_bytes=32 * 1024 * 1024,
        ),
    )(x_stacked, w_stacked)


# ---------------------------------------------------------------------------
# Weight preparation — done ONCE per layer (hoisted out of the forward path).
# weights1: (Ci, Co, M) complex64  ->  (M, 2Ci, 2Co) bf16 stacked real form.
# ---------------------------------------------------------------------------
def prepare_spectral_weights(weights1):
    wr = jnp.transpose(jnp.real(weights1), (2, 0, 1)).astype(jnp.float32)  # (M,Ci,Co)
    wi = jnp.transpose(jnp.imag(weights1), (2, 0, 1)).astype(jnp.float32)
    top = jnp.concatenate([wr, wi], axis=-1)          # (M, Ci, 2Co)
    bot = jnp.concatenate([-wi, wr], axis=-1)         # (M, Ci, 2Co)
    w_stacked = jnp.concatenate([top, bot], axis=-2)  # (M, 2Ci, 2Co)
    return w_stacked.astype(jnp.bfloat16)


# ---------------------------------------------------------------------------
# Forward pass matching PyTorch SpectralConv1d.forward
#   x         : (B, Ci, N) float32
#   w_stacked : (M, 2Ci, 2Co) bf16  (from prepare_spectral_weights)
#   returns   : (B, Co, N) float32
# ---------------------------------------------------------------------------
def spectral_conv1d(x, w_stacked):
    B, Ci, N = x.shape
    M, two_ci, two_co = w_stacked.shape
    Co = two_co // 2

    # FFT in plain JAX (no Pallas FFT primitive).
    x_ft = jnp.fft.rfft(x, axis=-1)                       # (B, Ci, N//2+1) c64
    x_modes = x_ft[:, :, :M]                              # (B, Ci, M)

    # Mode-major, stacked [real || imag] kernel input: one transpose total.
    x_ri = jnp.concatenate([jnp.real(x_modes), jnp.imag(x_modes)], axis=1)  # (B,2Ci,M)
    x_stacked = jnp.transpose(x_ri, (2, 0, 1)).astype(jnp.bfloat16)         # (M,B,2Ci)

    # Pad batch to the sublane width (8); pick the mode block and pad modes to it.
    Bp = -(-B // 8) * 8
    mt = _choose_mode_block(M, Bp, two_ci, two_co)
    Mp = -(-M // mt) * mt
    if (Mp, Bp) != (M, B):
        x_stacked = jnp.pad(x_stacked, ((0, Mp - M), (0, Bp - B), (0, 0)))
    w_in = w_stacked if Mp == M else jnp.pad(w_stacked, ((0, Mp - M), (0, 0), (0, 0)))

    out = _compl_mul1d_pallas(x_stacked, w_in, mt)        # (Mp, Bp, 2Co) f32
    out = out[:M, :B, :]                                  # drop padding

    out_modes = jax.lax.complex(out[..., :Co], out[..., Co:])  # (M, B, Co) c64
    out_modes = jnp.transpose(out_modes, (1, 2, 0))            # (B, Co, M)

    out_ft = jnp.zeros((B, Co, N // 2 + 1), dtype=jnp.complex64)
    out_ft = out_ft.at[:, :, :M].set(out_modes)

    return jnp.fft.irfft(out_ft, n=N, axis=-1)                 # (B, Co, N)


if __name__ == "__main__":
    # Small shapes consistent with the module.
    batch, in_channels, out_channels, modes1, N = 2, 4, 4, 8, 16

    key = jax.random.PRNGKey(0)
    kx, kwr, kwi = jax.random.split(key, 3)

    x = jax.random.normal(kx, (batch, in_channels, N), dtype=jnp.float32)

    # torch.rand(..., dtype=cfloat) draws real and imag parts each uniform [0,1).
    scale = 1.0 / (in_channels * out_channels)
    w_r = jax.random.uniform(kwr, (in_channels, out_channels, modes1), dtype=jnp.float32)
    w_i = jax.random.uniform(kwi, (in_channels, out_channels, modes1), dtype=jnp.float32)
    weights1 = (scale * (w_r + 1j * w_i)).astype(jnp.complex64)

    # Hoisted, one-time weight layout prep (per-layer parameter).
    w_stacked = prepare_spectral_weights(weights1)

    fwd = jax.jit(spectral_conv1d)
    out = fwd(x, w_stacked)
    out = jax.block_until_ready(out)

    # Pure-JAX reference (full-precision) for the forward pass.
    x_ft = jnp.fft.rfft(x, axis=-1)
    ref_modes = jnp.einsum("bix,iox->box", x_ft[:, :, :modes1], weights1)
    ref_ft = jnp.zeros((batch, out_channels, N // 2 + 1), dtype=jnp.complex64)
    ref_ft = ref_ft.at[:, :, :modes1].set(ref_modes)
    ref = jnp.fft.irfft(ref_ft, n=N, axis=-1)

    assert out.shape == (batch, out_channels, N)
    # Kernel I/O is bf16 (f32 accumulation), so tolerance is relaxed vs 1e-5.
    assert jnp.allclose(out, ref, atol=2e-2, rtol=2e-2)
    print("KERNEL_OK")
</pallas_src>

<mosaic_0001>
module attributes {stable_mosaic.version = 11 : i64} {
  func.func @_spectral_mul_kernel(%arg0: i32, %arg1: memref<8x8x8xbf16, #tpu.memory_space<vmem>>, %arg2: memref<8x8x8xbf16, #tpu.memory_space<vmem>>, %arg3: memref<8x8x8xf32, #tpu.memory_space<vmem>>) attributes {dimension_semantics = [#tpu.dimension_semantics<parallel>], iteration_bounds = array<i64: 1>, scalar_prefetch = 0 : i64, scratch_operands = 0 : i64, tpu.core_type = #tpu.core_type<tc>, window_params = [{transform_indices = @transform_0, window_bounds = array<i64: 8, 8, 8>}, {transform_indices = @transform_1, window_bounds = array<i64: 8, 8, 8>}, {transform_indices = @transform_2, window_bounds = array<i64: 8, 8, 8>}]} {
    %c0 = arith.constant 0 : index
    %c0_0 = arith.constant 0 : index
    %c0_1 = arith.constant 0 : index
    %0 = vector.load %arg1[%c0, %c0_0, %c0_1] : memref<8x8x8xbf16, #tpu.memory_space<vmem>>, vector<8x8x8xbf16>
    %c0_2 = arith.constant 0 : index
    %c0_3 = arith.constant 0 : index
    %c0_4 = arith.constant 0 : index
    %1 = vector.load %arg2[%c0_2, %c0_3, %c0_4] : memref<8x8x8xbf16, #tpu.memory_space<vmem>>, vector<8x8x8xbf16>
    %cst = arith.constant dense<0.000000e+00> : vector<8x8x8xf32>
    %2 = tpu.matmul %0, %1, %cst {dimension_numbers = #tpu.dot_dimension_numbers<[2], [1], [1], [2], [0, 0, 0, 1, 1, 2], [0], [0]>} : vector<8x8x8xbf16>, vector<8x8x8xbf16>, vector<8x8x8xf32> -> vector<8x8x8xf32>
    %c0_5 = arith.constant 0 : index
    %c0_6 = arith.constant 0 : index
    %c0_7 = arith.constant 0 : index
    %3 = vector.load %arg3[%c0_5, %c0_6, %c0_7] : memref<8x8x8xf32, #tpu.memory_space<vmem>>, vector<8x8x8xf32>
    tpu.vector_store %arg3[%c0_5, %c0_6, %c0_7], %2 {strides = array<i32>} : memref<8x8x8xf32, #tpu.memory_space<vmem>>, vector<8x8x8xf32>,
    return
  }
  func.func @transform_0(%arg0: i32) -> (i32, i32, i32) {
    %c0_i32 = arith.constant 0 : i32
    %c0_i32_0 = arith.constant 0 : i32
    %c0_i32_1 = arith.constant 0 : i32
    return %arg0, %c0_i32, %c0_i32_0 : i32, i32, i32
  }
  func.func @transform_1(%arg0: i32) -> (i32, i32, i32) {
    %c0_i32 = arith.constant 0 : i32
    %c0_i32_0 = arith.constant 0 : i32
    %c0_i32_1 = arith.constant 0 : i32
    return %arg0, %c0_i32, %c0_i32_0 : i32, i32, i32
  }
  func.func @transform_2(%arg0: i32) -> (i32, i32, i32) {
    %c0_i32 = arith.constant 0 : i32
    %c0_i32_0 = arith.constant 0 : i32
    %c0_i32_1 = arith.constant 0 : i32
    return %arg0, %c0_i32, %c0_i32_0 : i32, i32, i32
  }
}

</mosaic_0001>

<bundles_post_ra>
// kernel: reverse.1
= control target key start
LH: loop header
LB: loop body
LE: loop exit
PB: predicated region body
PF: predicated region fallthrough
CT: control target
= control target key end

     0   :  { %s92_s0 = inlined_call_operand.vmem [shape: f32[2,4,7], index: 0, kind: input, shape index: {}]   ;;  %s93_s1 = inlined_call_operand.vmem [shape: f32[2,4,7], index: 1, kind: output, shape index: {}]  }
   0x1   :  { %v28_v0 = vld [vmem:[%s92_s0 + $0xc] sm:$0x3]  ;;  %v29_v1 = vld [vmem:[%s92_s0 + $0xa] sm:$0x3]  ;;  %v31_v2 = vld [vmem:[%s92_s0 + $0x8] sm:$0x3] }
   0x2   :  { %4 = vst [vmem:[%s93_s1] sm:$0x3] %v28_v0  ;;  %30 = vst [vmem:[%s93_s1 + $0x2] sm:$0x3] %v29_v1  ;;  %v33_v3 = vld [vmem:[%s92_s0 + $0x6] sm:$0x3] }
   0x3   :  { %32 = vst [vmem:[%s93_s1 + $0x4] sm:$0x3] %v31_v2  ;;  %v35_v4 = vld [vmem:[%s92_s0 + $0x4] sm:$0x3]  ;;  %v37_v5 = vld [vmem:[%s92_s0 + $0x2] sm:$0x3] }
   0x4   :  { %34 = vst [vmem:[%s93_s1 + $0x6] sm:$0x3] %v33_v3  ;;  %36 = vst [vmem:[%s93_s1 + $0x8] sm:$0x3] %v35_v4  ;;  %v25_v6 = vld [vmem:[%s92_s0] sm:$0x3] }
   0x5   :  { %38 = vst [vmem:[%s93_s1 + $0xa] sm:$0x3] %v37_v5  ;;  %39 = vst [vmem:[%s93_s1 + $0xc] sm:$0x3] %v25_v6 }

// kernel: spectral_conv1d.1
= control target key start
LH: loop header
LB: loop body
LE: loop exit
PB: predicated region body
PF: predicated region fallthrough
CT: control target
= control target key end

     0   :  { %vm32_vm0 = vcmask 1043456   ;;  %v484_v0 = vmov 0.0   ;;  %vm485_vm1 = vmmov 0   ;;  %vm28_vm2 = vcmask 64512   ;;  %s605_s1 = inlined_call_operand.vmem [shape: bf16[8,8,8], index: 1, kind: input, shape index: {}]   ;;  %s606_s0 = inlined_call_operand.vmem [shape: bf16[8,8,8], index: 0, kind: input, shape index: {}]   ;;  %s607_s2 = inlined_call_operand.vmem [shape: f32[8,8,8], index: 2, kind: output, shape index: {}]  }
   0x1   :  { %434 = vmatprep.subr.bf16.mxu0 %v484_v0  ;;  %440 = vmatprep.subr.bf16.mxu1 %v484_v0  ;;  %v20_v1 = vld [vmem:[%s605_s1] sm:$0xf]  ;;  %v21_v2 = vld [vmem:[%s605_s1 + $0x4] sm:$0xf]  ;;  %v22_v5 = vld [vmem:[%s605_s1 + $0x8] sm:$0xf] }
   0x2   :  { %v34_v3 = vsel %vm32_vm0, %v20_v1, 0  ;;  %v80_v4 = vsel %vm32_vm0, %v21_v2, 0  ;;  %436 = vmatprep.mubr.msk.bf16.mxu0 %vm485_vm1, %v484_v0  ;;  %442 = vmatprep.mubr.msk.bf16.mxu1 %vm485_vm1, %v484_v0  ;;  %v12_v6 = vld [vmem:[%s606_s0] sm:$0xf]  ;;  %v13_v7 = vld [vmem:[%s606_s0 + $0x4] sm:$0xf] }
   0x3   :  { %435 = vmatpush3.bf16.msra.mxu0 %v34_v3  ;;  %441 = vmatpush3.bf16.msra.mxu1 %v80_v4  ;;  %v23_v8 = vld [vmem:[%s605_s1 + $0xc] sm:$0xf]  ;;  %v126_v9 = vsel %vm32_vm0, %v22_v5, 0  ;;  %v24_v11 = vld [vmem:[%s605_s1 + $0x10] sm:$0xf] }
   0x4   :  { %446 = vmatprep.subr.bf16.mxu0 %v484_v0  ;;  %452 = vmatprep.subr.bf16.mxu1 %v484_v0  ;;  %v172_v10 = vsel %vm32_vm0, %v23_v8, 0  ;;  %v25_v12 = vld [vmem:[%s605_s1 + $0x14] sm:$0xf]  ;;  %v14_v13 = vld [vmem:[%s606_s0 + $0x8] sm:$0xf]  ;;  %v218_v15 = vsel %vm32_vm0, %v24_v11, 0 }
   0x5   :  { %v15_v14 = vld [vmem:[%s606_s0 + $0xc] sm:$0xf]  ;;  %v264_v16 = vsel %vm32_vm0, %v25_v12, 0  ;;  %v26_v17 = vld [vmem:[%s605_s1 + $0x18] sm:$0xf] }
   0x6   :  { %437 = vmatmul.mubr.msk.bf16.vlgmr.msra.gmra.mrb[0].mxu0 %vm28_vm2, %v12_v6  ;;  %443 = vmatmul.mubr.msk.bf16.vlgmr.msra.gmra.mrb[0].mxu1 %vm28_vm2, %v13_v7  ;;  %v27_v18 = vld [vmem:[%s605_s1 + $0x1c] sm:$0xf]  ;;  %v16_v19 = vld [vmem:[%s606_s0 + $0x10] sm:$0xf]  ;;  %v17_v20 = vld [vmem:[%s606_s0 + $0x14] sm:$0xf] }
   0x7   :  { %447 = vmatpush3.bf16.msra.mxu0 %v126_v9  ;;  %453 = vmatpush3.bf16.msra.mxu1 %v172_v10  ;;  %v310_v21 = vsel %vm32_vm0, %v26_v17, 0  ;;  %v356_v22 = vsel %vm32_vm0, %v27_v18, 0  ;;  %v18_v23 = vld [vmem:[%s606_s0 + $0x18] sm:$0xf]  ;;  %v19_v24 = vld [vmem:[%s606_s0 + $0x1c] sm:$0xf] }
   0x8   :  { %448 = vmatprep.mubr.msk.bf16.mxu0 %vm485_vm1, %v484_v0  ;;  %454 = vmatprep.mubr.msk.bf16.mxu1 %vm485_vm1, %v484_v0 }
   0x9   :  { %458 = vmatprep.subr.bf16.mxu0 %v484_v0  ;;  %464 = vmatprep.subr.bf16.mxu1 %v484_v0 }
   0xe   :  { %449 = vmatmul.mubr.msk.bf16.vlgmr.msra.gmra.mrb[4].mxu0 %vm28_vm2, %v14_v13  ;;  %455 = vmatmul.mubr.msk.bf16.vlgmr.msra.gmra.mrb[4].mxu1 %vm28_vm2, %v15_v14 }
   0xf   :  { %459 = vmatpush3.bf16.msra.mxu0 %v218_v15  ;;  %465 = vmatpush3.bf16.msra.mxu1 %v264_v16 }
  0x10   :  { %460 = vmatprep.mubr.msk.bf16.mxu0 %vm485_vm1, %v484_v0  ;;  %466 = vmatprep.mubr.msk.bf16.mxu1 %vm485_vm1, %v484_v0 }
  0x11   :  { %470 = vmatprep.subr.bf16.mxu0 %v484_v0  ;;  %476 = vmatprep.subr.bf16.mxu1 %v484_v0 }
  0x16   :  { %461 = vmatmul.mubr.msk.bf16.vlgmr.msra.gmra.mrb[8].mxu0 %vm28_vm2, %v16_v19  ;;  %467 = vmatmul.mubr.msk.bf16.vlgmr.msra.gmra.mrb[8].mxu1 %vm28_vm2, %v17_v20 }
  0x17   :  { %471 = vmatpush3.bf16.msra.mxu0 %v310_v21  ;;  %477 = vmatpush3.bf16.msra.mxu1 %v356_v22 }
  0x18   :  { %472 = vmatprep.mubr.msk.bf16.mxu0 %vm485_vm1, %v484_v0  ;;  %478 = vmatprep.mubr.msk.bf16.mxu1 %vm485_vm1, %v484_v0 }
  0x1e   :  { %473 = vmatmul.mubr.msk.bf16.vlgmr.msra.gmra.mrb[12].mxu0 %vm28_vm2, %v18_v23  ;;  %479 = vmatmul.mubr.msk.bf16.vlgmr.msra.gmra.mrb[12].mxu1 %vm28_vm2, %v19_v24 }
  0xd9   :  { %v70_v25 = vpop.f32.mrb[0].mxu0  ;;  %v116_v26 = vpop.f32.mrb[0].mxu1 }
  0xda   :  { %398 = vst.msk [vmem:[%s607_s2] sm:$0xff] %vm28_vm2, %v70_v25  ;;  %399 = vst.msk [vmem:[%s607_s2 + $0x8] sm:$0xff] %vm28_vm2, %v116_v26  ;;  %v438_v27 = vpop.f32.mrb[1].mxu0  ;;  %v444_v28 = vpop.f32.mrb[1].mxu1 }
  0xdb   :  { %v73_v29 = vpop.f32.mrb[2].mxu0  ;;  %v119_v30 = vpop.f32.mrb[2].mxu1 }
  0xdc   :  { %v439_v31 = vpop.f32.mrb[3].mxu0  ;;  %v445_v32 = vpop.f32.mrb[3].mxu1 }
  0xe1   :  { %v162_v33 = vpop.f32.mrb[4].mxu0  ;;  %v208_v34 = vpop.f32.mrb[4].mxu1 }
  0xe2   :  { %400 = vst.msk [vmem:[%s607_s2 + $0x10] sm:$0xff] %vm28_vm2, %v162_v33  ;;  %401 = vst.msk [vmem:[%s607_s2 + $0x18] sm:$0xff] %vm28_vm2, %v208_v34  ;;  %v450_v35 = vpop.f32.mrb[5].mxu0  ;;  %v456_v36 = vpop.f32.mrb[5].mxu1 }
  0xe3   :  { %v165_v37 = vpop.f32.mrb[6].mxu0  ;;  %v211_v38 = vpop.f32.mrb[6].mxu1 }
  0xe4   :  { %v451_v39 = vpop.f32.mrb[7].mxu0  ;;  %v457_v40 = vpop.f32.mrb[7].mxu1 }
  0xe9   :  { %v254_v41 = vpop.f32.mrb[8].mxu0  ;;  %v300_v42 = vpop.f32.mrb[8].mxu1 }
  0xea   :  { %402 = vst.msk [vmem:[%s607_s2 + $0x20] sm:$0xff] %vm28_vm2, %v254_v41  ;;  %403 = vst.msk [vmem:[%s607_s2 + $0x28] sm:$0xff] %vm28_vm2, %v300_v42  ;;  %v462_v43 = vpop.f32.mrb[9].mxu0  ;;  %v468_v44 = vpop.f32.mrb[9].mxu1 }
  0xeb   :  { %v257_v45 = vpop.f32.mrb[10].mxu0  ;;  %v303_v46 = vpop.f32.mrb[10].mxu1 }
  0xec   :  { %v463_v47 = vpop.f32.mrb[11].mxu0  ;;  %v469_v48 = vpop.f32.mrb[11].mxu1 }
  0xf1   :  { %v346_v49 = vpop.f32.mrb[12].mxu0  ;;  %v392_v50 = vpop.f32.mrb[12].mxu1 }
  0xf2   :  { %404 = vst.msk [vmem:[%s607_s2 + $0x30] sm:$0xff] %vm28_vm2, %v346_v49  ;;  %405 = vst.msk [vmem:[%s607_s2 + $0x38] sm:$0xff] %vm28_vm2, %v392_v50  ;;  %v474_v51 = vpop.f32.mrb[13].mxu0  ;;  %v480_v52 = vpop.f32.mrb[13].mxu1 }
  0xf3   :  { %v349_v53 = vpop.f32.mrb[14].mxu0  ;;  %v395_v54 = vpop.f32.mrb[14].mxu1 }
  0xf4   :  { %v475_v55 = vpop.f32.mrb[15].mxu0  ;;  %v481_v56 = vpop.f32.mrb[15].mxu1 }

</bundles_post_ra>
